<compile_context>
chip_gen: v6e
topology: v6e:2x2x1
jax: 0.10.0
libtpu: 0.0.40
codegen_flags: <defaults>
</compile_context>

<pallas_src>
import jax
import jax.numpy as jnp
from jax import lax
from jax.experimental import pallas as pl
from jax.experimental.pallas import tpu as pltpu


def _round_up(a, b):
    return (a + b - 1) // b * b


def _i32const(v):
    """Python int -> signed int32 constant with wraparound semantics."""
    v &= 0xFFFFFFFF
    if v >= (1 << 31):
        v -= 1 << 32
    return jnp.int32(v)


def _linear_rand_relu_kernel(seed_ref, params_ref, x_ref, o_ref):
    # --- scalars from SMEM ---------------------------------------------------
    w0 = params_ref[0]
    w1 = params_ref[1]
    w2 = params_ref[2]
    b = params_ref[3]
    seed = seed_ref[0]

    # --- linear layer: y = x @ W^T + b, unrolled over K = 3 (VPU FMA) --------
    # x_ref block is (3, tile_r, tile_c); each plane is a dense 2-D slab.
    v1 = x_ref[0] * w0 + x_ref[1] * w1 + x_ref[2] * w2 + b   # (tile_r, tile_c)

    tile_r, tile_c = o_ref.shape

    # --- uniform [0,1) randoms: splitmix32-style hash of global index --------
    golden = _i32const(0x9E3779B9)
    row_mul = _i32const(tile_c * 0x9E3779B9)     # (lane-extent * golden) mod 2^32
    c1 = _i32const(0x7FEB352D)
    c2 = _i32const(0x846CA68B)

    # Scalar (per-tile-constant) part hoisted onto the scalar unit:
    #   global_idx = pid*tile_r*tile_c + row*tile_c + lane   (tile_c == C_total)
    base = seed + (pl.program_id(0) * (tile_r * tile_c) + 1) * golden

    row = lax.broadcasted_iota(jnp.int32, o_ref.shape, 0)
    lane = lax.broadcasted_iota(jnp.int32, o_ref.shape, 1)
    h = base + row * row_mul + lane * golden

    def lsr(v, k):  # logical right shift on int32 bit patterns
        return (v >> k) & jnp.int32((1 << (32 - k)) - 1)

    h = (h ^ lsr(h, 16)) * c1
    h = (h ^ lsr(h, 15)) * c2
    h = h ^ lsr(h, 16)
    # top-ish 24 bits -> exact f32 integer -> uniform [0, 1)
    v2 = (h & jnp.int32(0x00FFFFFF)).astype(jnp.float32) * jnp.float32(
        1.0 / 16777216.0)

    # --- add + relu -----------------------------------------------------------
    o_ref[...] = jnp.maximum(v1 + v2, jnp.float32(0.0))


def linear_rand_relu(x, weight, bias, seed, *, tile_r=256, max_lanes=1024):
    """x: (N, 3), weight: (1, 3), bias: (1,), seed: int  ->  (N, 1) float32."""
    n = x.shape[0]
    assert x.shape[1] == 3

    # 2-D batch layout: N -> (R_total, C_total) with C a multiple of 128 and
    # R a multiple of the sublane tile.  Block = (tile_r_eff, C_total).
    c_total = min(max_lanes, _round_up(max(n, 1), 128))
    r_needed = pl.cdiv(n, c_total)
    tile_r_eff = min(tile_r, _round_up(r_needed, 8))
    r_total = _round_up(r_needed, tile_r_eff)
    n_pad = r_total * c_total

    # Single fused layout pass: (N,3) -> per-feature planes (3, R, C).
    # TODO(synk): accept x already in (3, R, C) upstream to drop this copy.
    x_t = jnp.transpose(x.astype(jnp.float32))           # (3, N)
    if n_pad != n:
        x_t = jnp.pad(x_t, ((0, 0), (0, n_pad - n)))
    x_planes = x_t.reshape(3, r_total, c_total)

    params = jnp.concatenate(
        [weight.reshape(-1).astype(jnp.float32),
         bias.reshape(-1).astype(jnp.float32)])           # (4,) = [w0, w1, w2, b]
    seed_arr = jnp.asarray([seed], dtype=jnp.int32)

    out = pl.pallas_call(
        _linear_rand_relu_kernel,
        grid=(r_total // tile_r_eff,),
        out_shape=jax.ShapeDtypeStruct((r_total, c_total), jnp.float32),
        in_specs=[
            pl.BlockSpec(memory_space=pltpu.MemorySpace.SMEM),        # seed  (1,)
            pl.BlockSpec(memory_space=pltpu.MemorySpace.SMEM),        # params (4,)
            pl.BlockSpec((3, tile_r_eff, c_total), lambda i: (0, i, 0)),
        ],
        out_specs=pl.BlockSpec((tile_r_eff, c_total), lambda i: (i, 0)),
        compiler_params=pltpu.CompilerParams(
            dimension_semantics=("parallel",)),
        cost_estimate=pl.CostEstimate(
            flops=6 * n_pad, transcendentals=0, bytes_accessed=16 * n_pad),
    )(seed_arr, params, x_planes)

    # Padded tail elements hold garbage -- slice before returning.
    return out.reshape(-1)[:n].reshape(n, 1)


if __name__ == "__main__":
    key = jax.random.PRNGKey(0)
    kx, kw, kb, kbig = jax.random.split(key, 4)

    # Input consistent with the module: x1 ~ randn(1, 3)
    x1 = jax.random.normal(kx, (1, 3), dtype=jnp.float32)

    # nn.Linear(3, 1) default init: U(-1/sqrt(3), 1/sqrt(3))
    bound = 1.0 / (3.0 ** 0.5)
    weight = jax.random.uniform(kw, (1, 3), minval=-bound, maxval=bound,
                                dtype=jnp.float32)
    bias = jax.random.uniform(kb, (1,), minval=-bound, maxval=bound,
                              dtype=jnp.float32)

    out = jax.block_until_ready(linear_rand_relu(x1, weight, bias, seed=0))

    assert out.shape == (1, 1)
    assert out.dtype == jnp.float32

    # relu(v1 + U[0,1)) must lie in [relu(v1), relu(v1 + 1)]
    v1 = x1 @ weight.T + bias
    assert bool(jnp.all(out >= 0.0))
    assert bool(jnp.all(out >= jnp.maximum(v1, 0.0) - 1e-5))
    assert bool(jnp.all(out <= jnp.maximum(v1 + 1.0, 0.0) + 1e-5))

    # Larger ragged batch to exercise the 2-D (sublane x lane) tiling path.
    n_big = 4096 + 37
    x_big = jax.random.normal(kbig, (n_big, 3), dtype=jnp.float32)
    out_big = jax.block_until_ready(
        linear_rand_relu(x_big, weight, bias, seed=123))
    v1_big = x_big @ weight.T + bias
    assert out_big.shape == (n_big, 1)
    assert bool(jnp.all(out_big >= jnp.maximum(v1_big, 0.0) - 1e-5))
    assert bool(jnp.all(out_big <= jnp.maximum(v1_big + 1.0, 0.0) + 1e-5))

    print("KERNEL_OK")
</pallas_src>

<mosaic_0001>
module attributes {stable_mosaic.version = 11 : i64} {
  func.func @_linear_rand_relu_kernel(%arg0: i32, %arg1: memref<1xi32, #tpu.memory_space<smem>>, %arg2: memref<4xf32, #tpu.memory_space<smem>>, %arg3: memref<3x8x128xf32, #tpu.memory_space<vmem>>, %arg4: memref<8x128xf32, #tpu.memory_space<vmem>>) attributes {dimension_semantics = [#tpu.dimension_semantics<parallel>], iteration_bounds = array<i64: 1>, scalar_prefetch = 0 : i64, scratch_operands = 0 : i64, tpu.core_type = #tpu.core_type<tc>, window_params = [{transform_indices = @transform_0, window_bounds = array<i64: 1>}, {transform_indices = @transform_1, window_bounds = array<i64: 4>}, {transform_indices = @transform_2, window_bounds = array<i64: 3, 8, 128>}, {transform_indices = @transform_3, window_bounds = array<i64: 8, 128>}]} {
    %c0 = arith.constant 0 : index
    %0 = memref.load %arg2[%c0] : memref<4xf32, #tpu.memory_space<smem>>
    %c1 = arith.constant 1 : index
    %1 = memref.load %arg2[%c1] : memref<4xf32, #tpu.memory_space<smem>>
    %c2 = arith.constant 2 : index
    %2 = memref.load %arg2[%c2] : memref<4xf32, #tpu.memory_space<smem>>
    %c3 = arith.constant 3 : index
    %3 = memref.load %arg2[%c3] : memref<4xf32, #tpu.memory_space<smem>>
    %c0_0 = arith.constant 0 : index
    %4 = memref.load %arg1[%c0_0] : memref<1xi32, #tpu.memory_space<smem>>
    %c0_1 = arith.constant 0 : index
    %c0_2 = arith.constant 0 : index
    %c0_3 = arith.constant 0 : index
    %5 = vector.load %arg3[%c0_1, %c0_2, %c0_3] : memref<3x8x128xf32, #tpu.memory_space<vmem>>, vector<1x8x128xf32>
    %6 = vector.shape_cast %5 : vector<1x8x128xf32> to vector<8x128xf32>
    %7 = vector.broadcast %0 : f32 to vector<8x128xf32>
    %8 = arith.mulf %6, %7 : vector<8x128xf32>
    %c1_4 = arith.constant 1 : index
    %c0_5 = arith.constant 0 : index
    %c0_6 = arith.constant 0 : index
    %9 = vector.load %arg3[%c1_4, %c0_5, %c0_6] : memref<3x8x128xf32, #tpu.memory_space<vmem>>, vector<1x8x128xf32>
    %10 = vector.shape_cast %9 : vector<1x8x128xf32> to vector<8x128xf32>
    %11 = vector.broadcast %1 : f32 to vector<8x128xf32>
    %12 = arith.mulf %10, %11 : vector<8x128xf32>
    %13 = arith.addf %8, %12 : vector<8x128xf32>
    %c2_7 = arith.constant 2 : index
    %c0_8 = arith.constant 0 : index
    %c0_9 = arith.constant 0 : index
    %14 = vector.load %arg3[%c2_7, %c0_8, %c0_9] : memref<3x8x128xf32, #tpu.memory_space<vmem>>, vector<1x8x128xf32>
    %15 = vector.shape_cast %14 : vector<1x8x128xf32> to vector<8x128xf32>
    %16 = vector.broadcast %2 : f32 to vector<8x128xf32>
    %17 = arith.mulf %15, %16 : vector<8x128xf32>
    %18 = arith.addf %13, %17 : vector<8x128xf32>
    %19 = vector.broadcast %3 : f32 to vector<8x128xf32>
    %20 = arith.addf %18, %19 : vector<8x128xf32>
    %c1024_i32 = arith.constant 1024 : i32
    %21 = arith.muli %arg0, %c1024_i32 : i32
    %c1_i32 = arith.constant 1 : i32
    %22 = arith.addi %21, %c1_i32 : i32
    %c-1640531527_i32 = arith.constant -1640531527 : i32
    %23 = arith.muli %22, %c-1640531527_i32 : i32
    %24 = arith.addi %4, %23 : i32
    %25 = tpu.iota {dimensions = array<i32: 0>} : vector<8x128xi32>
    %26 = tpu.iota {dimensions = array<i32: 1>} : vector<8x128xi32>
    %c465362048_i32 = arith.constant 465362048 : i32
    %27 = vector.broadcast %c465362048_i32 : i32 to vector<8x128xi32>
    %28 = arith.muli %25, %27 : vector<8x128xi32>
    %29 = vector.broadcast %24 : i32 to vector<8x128xi32>
    %30 = arith.addi %29, %28 : vector<8x128xi32>
    %c-1640531527_i32_10 = arith.constant -1640531527 : i32
    %31 = vector.broadcast %c-1640531527_i32_10 : i32 to vector<8x128xi32>
    %32 = arith.muli %26, %31 : vector<8x128xi32>
    %33 = arith.addi %30, %32 : vector<8x128xi32>
    %c16_i32 = arith.constant 16 : i32
    %34 = vector.broadcast %c16_i32 : i32 to vector<8x128xi32>
    %35 = arith.shrsi %33, %34 : vector<8x128xi32>
    %c65535_i32 = arith.constant 65535 : i32
    %36 = vector.broadcast %c65535_i32 : i32 to vector<8x128xi32>
    %37 = arith.andi %35, %36 : vector<8x128xi32>
    %38 = arith.xori %33, %37 : vector<8x128xi32>
    %c2146121005_i32 = arith.constant 2146121005 : i32
    %39 = vector.broadcast %c2146121005_i32 : i32 to vector<8x128xi32>
    %40 = arith.muli %38, %39 : vector<8x128xi32>
    %c15_i32 = arith.constant 15 : i32
    %41 = vector.broadcast %c15_i32 : i32 to vector<8x128xi32>
    %42 = arith.shrsi %40, %41 : vector<8x128xi32>
    %c131071_i32 = arith.constant 131071 : i32
    %43 = vector.broadcast %c131071_i32 : i32 to vector<8x128xi32>
    %44 = arith.andi %42, %43 : vector<8x128xi32>
    %45 = arith.xori %40, %44 : vector<8x128xi32>
    %c-2073254261_i32 = arith.constant -2073254261 : i32
    %46 = vector.broadcast %c-2073254261_i32 : i32 to vector<8x128xi32>
    %47 = arith.muli %45, %46 : vector<8x128xi32>
    %c16_i32_11 = arith.constant 16 : i32
    %48 = vector.broadcast %c16_i32_11 : i32 to vector<8x128xi32>
    %49 = arith.shrsi %47, %48 : vector<8x128xi32>
    %c65535_i32_12 = arith.constant 65535 : i32
    %50 = vector.broadcast %c65535_i32_12 : i32 to vector<8x128xi32>
    %51 = arith.andi %49, %50 : vector<8x128xi32>
    %52 = arith.xori %47, %51 : vector<8x128xi32>
    %c16777215_i32 = arith.constant 16777215 : i32
    %53 = vector.broadcast %c16777215_i32 : i32 to vector<8x128xi32>
    %54 = arith.andi %52, %53 : vector<8x128xi32>
    %55 = arith.sitofp %54 : vector<8x128xi32> to vector<8x128xf32>
    %cst = arith.constant 5.96046448E-8 : f32
    %56 = vector.broadcast %cst : f32 to vector<8x128xf32>
    %57 = arith.mulf %55, %56 : vector<8x128xf32>
    %58 = arith.addf %20, %57 : vector<8x128xf32>
    %cst_13 = arith.constant 0.000000e+00 : f32
    %59 = vector.broadcast %cst_13 : f32 to vector<8x128xf32>
    %60 = arith.maximumf %58, %59 : vector<8x128xf32>
    %c0_14 = arith.constant 0 : index
    %c0_15 = arith.constant 0 : index
    %61 = vector.load %arg4[%c0_14, %c0_15] : memref<8x128xf32, #tpu.memory_space<vmem>>, vector<8x128xf32>
    tpu.vector_store %arg4[%c0_14, %c0_15], %60 {strides = array<i32>} : memref<8x128xf32, #tpu.memory_space<vmem>>, vector<8x128xf32>,
    return
  }
  func.func @transform_0(%arg0: i32) -> i32 {
    %c0_i32 = arith.constant 0 : i32
    %c0_i32_0 = arith.constant 0 : i32
    return %c0_i32 : i32
  }
  func.func @transform_1(%arg0: i32) -> i32 {
    %c0_i32 = arith.constant 0 : i32
    %c0_i32_0 = arith.constant 0 : i32
    return %c0_i32 : i32
  }
  func.func @transform_2(%arg0: i32) -> (i32, i32, i32) {
    %c0_i32 = arith.constant 0 : i32
    %c0_i32_0 = arith.constant 0 : i32
    %c0_i32_1 = arith.constant 0 : i32
    return %c0_i32, %arg0, %c0_i32_0 : i32, i32, i32
  }
  func.func @transform_3(%arg0: i32) -> (i32, i32) {
    %c0_i32 = arith.constant 0 : i32
    %c0_i32_0 = arith.constant 0 : i32
    return %arg0, %c0_i32 : i32, i32
  }
}

</mosaic_0001>

<bundles_post_ra>
// kernel: tpu_custom_call.1
= control target key start
LH: loop header
LB: loop body
LE: loop exit
PB: predicated region body
PF: predicated region fallthrough
CT: control target
= control target key end

     0   :  { %9 = vsyncpa [#allocation6], 0  ;;  %s215_s0 = inlined_call_operand.<no memory space> [shape: s32[1], index: 0, kind: input, shape index: {}]   ;;  %s216_s1 = inlined_call_operand.vmem [shape: f32[4], index: 1, kind: input, shape index: {}]   ;;  %s217_s2 = inlined_call_operand.hbm [shape: f32[3,8,128], index: 2, kind: input, shape index: {}]   ;;  %s218_s3 = inlined_call_operand.hbm [shape: f32[8,128], index: 3, kind: output, shape index: {}]  }
   0x1   :  { %10 = vsyncpa [#allocation4], 0 }
   0x2   :  { %11 = vsyncpa [#allocation5], 0  ;;  %s20_s14 = sshll.u32 %s216_s1, 4  ;;  %s21_s14 = int_to_ptr.vmem [resolvable:$true] %s20_s14 }
   0x3   :  { %s120_s15 = scalar_lea.vmem %s21_s14, 16  ;;  %p125_p1 = scmp.lt.s32.totalorder %s21_s14, %s21_s14 }
   0x4   :  { %p121_p0 = scmp.ne.s32.totalorder %s21_s14, %s120_s15  ;;  %p126_p2 = scmp.lt.s32.totalorder %s120_s15, %s120_s15 }
   0x6   :  { %p127_p3 = por %p126_p2, %p125_p1 }
   0x8   :  { %p128_p4 = pnand %p127_p3, %p121_p0 }
   0xa   :  { %131 = shalt.err (!%p128_p4)
}
   0xb   :  { %s178_s16 = smov [#allocation3]   ;;  %s179_s17 = smov [#allocation7]  }
   0xc   :  { %23 = dma.vmem_to_smem %s21_s14, 16, %s178_s16, [#allocation6]  }
   0xd   :  { %s29_s18 = sshll.u32 %s179_s17, 4  ;;  %s30_s18 = int_to_ptr.vmem [resolvable:$true] %s29_s18 }
   0xe   :  { %s140_s19 = scalar_lea.vmem %s30_s18, 384  ;;  %p145_p6 = scmp.lt.s32.totalorder %s30_s18, %s30_s18 }
   0xf   :  { %p141_p5 = scmp.ne.s32.totalorder %s30_s18, %s140_s19  ;;  %p146_p7 = scmp.lt.s32.totalorder %s140_s19, %s140_s19 }
  0x11   :  { %p147_p8 = por %p146_p7, %p145_p6 }
  0x13   :  { %p148_p9 = pnand %p147_p8, %p141_p5 }
  0x15   :  { %151 = shalt.err (!%p148_p9)
}
  0x16   :  { %s180_s1 = smov 128   ;;  %s181_s20 = smov 8  }
  0x17   :  { %35 = dma.hbm_to_vmem [thread:$0]  %s217_s2, 384, %s30_s18, [#allocation4], %s180_s1, %s180_s1, %s181_s20  }
  0x18   :  { %172 = dma.done.wait [#allocation6], 16  }
  0x19   :  { %173 = vsyncadd [#allocation6], 4294967280 }
  0x1a   :  { %174 = dma.done.wait [#allocation4], 384  }
  0x1b   :  { %175 = vsyncadd [#allocation4], 4294966912 }
  0x1c   :  { %42 = sfence }
  0x1d   :  { %v67_v0 = vlaneseq  ;;  %s66_s25 = sadd.s32 2654435769, %s215_s0  ;;  %s43_s26 = sld [smem:[#allocation3]]  ;;  %v48_v10 = vld [vmem:[#allocation7] sm:$0xff]  ;;  %v52_v12 = vld [vmem:[#allocation7 + $0x8] sm:$0xff]  ;;  %v57_v18 = vld [vmem:[#allocation7 + $0x10] sm:$0xff] }
  0x1e   :  { %v72_v3 = vstv %s66_s25  ;;  %s109_s27 = sld [smem:[#allocation3 + $0x1]]  ;;  %s182_s28 = smov [#allocation8]  }
  0x1f   :  { %v68_v1 = vshrl.u32 %v67_v0, 7  ;;  %v70_v2 = vand.u32 127, %v67_v0  ;;  %s110_s2 = sld [smem:[#allocation3 + $0x2]]  ;;  %s99_s29 = sshll.u32 %s182_s28, 4  ;;  %s100_s29 = int_to_ptr.vmem [resolvable:$true] %s99_s29 }
  0x20   :  { %s111_s0 = sld [smem:[#allocation3 + $0x3]]  ;;  %s152_s30 = scalar_lea.vmem %s100_s29, 128 }
  0x21   :  { %v71_v4 = vmul.u32 465362048, %v68_v1  ;;  %v74_v5 = vmul.u32 2654435769, %v70_v2  ;;  %p153_p10 = scmp.ne.s32.totalorder %s100_s29, %s152_s30  ;;  %p157_p11 = scmp.lt.s32.totalorder %s100_s29, %s100_s29 }
  0x22   :  { %p158_p12 = scmp.lt.s32.totalorder %s152_s30, %s152_s30 }
  0x23   :  { %v73_v6 = vadd.s32 %v72_v3, %v71_v4  ;;  %v49_v11 = vstv %s43_s26 }
  0x24   :  { %v53_v13 = vstv %s109_s27  ;;  %v50_v15 = vmul.f32 %v49_v11, %v48_v10  ;;  %p159_p13 = por %p158_p12, %p157_p11 }
  0x25   :  { %v75_v7 = vadd.s32 %v74_v5, %v73_v6  ;;  %v54_v16 = vmul.f32 %v53_v13, %v52_v12  ;;  %v58_v19 = vstv %s110_s2 }
  0x26   :  { %v59_v22 = vmul.f32 %v58_v19, %v57_v18  ;;  %v61_v27 = vstv %s111_s0  ;;  %p160_p0 = pnand %p159_p13, %p153_p10 }
  0x27   :  { %v112_v8 = vshrl.u32 %v75_v7, 16  ;;  %v55_v21 = vadd.f32 %v54_v16, %v50_v15 }
  0x29   :  { %v78_v9 = vxor.u32 %v112_v8, %v75_v7  ;;  %v60_v25 = vadd.f32 %v59_v22, %v55_v21 }
  0x2b   :  { %v79_v14 = vmul.u32 2146121005, %v78_v9  ;;  %v62_v29 = vadd.f32 %v61_v27, %v60_v25 }
  0x2d   :  { %v113_v17 = vshrl.u32 %v79_v14, 15 }
  0x2f   :  { %v82_v20 = vxor.u32 %v113_v17, %v79_v14 }
  0x31   :  { %v83_v23 = vmul.u32 2221713035, %v82_v20 }
  0x33   :  { %v114_v24 = vshrl.u32 %v83_v23, 16 }
  0x35   :  { %v86_v26 = vxor.u32 %v114_v24, %v83_v23 }
  0x37   :  { %v87_v28 = vand.u32 16777215, %v86_v26 }
  0x39   :  { %v88_v30 = vcvt.s32.f32 %v87_v28 }
  0x3b   :  { %v89_v31 = vmul.f32 5.9604645e-08, %v88_v30 }
  0x3d   :  { %v90_v32 = vadd.f32 %v89_v31, %v62_v29 }
  0x3f   :  { %v91_v33 = vmax.f32 %v90_v32, 0.0 }
  0x41   :  { %92 = vst [vmem:[#allocation8] sm:$0xff] %v91_v33 }
  0x42   :  { %163 = shalt.err (!%p160_p0)
}
  0x43   :  { %102 = dma.vmem_to_hbm [thread:$0]  %s100_s29, 128, %s218_s3, [#allocation5]  }
  0x44   :  { %176 = dma.done.wait [#allocation5], 128  }
  0x45   :  { %177 = vsyncadd [#allocation5], 4294967168 }
  0x46   :  { %106 = vsyncpa [#allocation4], 1 }
  0x47   :  { %107 = vsyncpa [#allocation5], 1 }
  0x48   :  { %108 = vsyncpa [#allocation6], 1 }

</bundles_post_ra>
